<compile_context>
chip_gen: v7x
topology: tpu7x:2x2x1
jax: 0.10.0
libtpu: 0.0.40
codegen_flags: <defaults>
</compile_context>

<pallas_src>
import jax
import jax.numpy as jnp
import numpy as np
from jax.experimental import pallas as pl
from jax.experimental.pallas import tpu as pltpu

# ----------------------------- sizes (args) ---------------------------------
INPUT_SHAPE = 32          # input_shape
HIDDEN = 32               # args.rnn_hidden_dim
EMBED = 16                # args.agent_subtask_embed_dim
N_SUBTASKS = 4            # args.n_subtasks
N_ACTIONS = 8             # args.n_actions
N_AGENTS = 4              # args.n_agents
BS = 2                    # batch size
B = BS * N_AGENTS         # rows fed to the agent (bs * n_agents) = 8
T_DEMO = 20               # rollout length for the multi-step demo

H2 = 2 * HIDDEN                       # 64  packed hidden [h_agent | h_policy]
G = 3 * H2                            # 192 interleaved gates [r_a|r_p|z_a|z_p|n_a|n_p]
SA = N_SUBTASKS * N_ACTIONS           # 32  flattened q
W2C = EMBED + SA                      # 48  fused fc2 out [agent_embed | q_flat]
OUT_LANES = 128                       # lane-dense packed output width

ROLLOUT_BLOCK_T = 8       # Tb: timesteps per grid step (use 32-128 for long T)


# ------------------------------- kernel -------------------------------------
def _make_kernel(tb):
    """Kernel for one block of `tb` timesteps (Tb*B rows batched phases)."""
    rows = tb * B

    def kernel(h0_ref, x_ref, w1_ref, b1_ref, wih_ref, bgi_ref, whh_ref,
               bhn_ref, w2_ref, b2_ref, wsubt_ref,
               out_ref, h_carry, gi_scr, h_scr):
        S, A, E = N_SUBTASKS, N_ACTIONS, EMBED

        @pl.when(pl.program_id(0) == 0)
        def _():
            h_carry[...] = h0_ref[...]

        def dot(a, b):
            return jnp.dot(a, b, preferred_element_type=jnp.float32)

        # ---------- batched prologue: everything not depending on h ----------
        # fc1 (both branches fused) and the input-side GRU gate projection for
        # all tb timesteps at once (M = tb*B rows).
        x12 = jax.nn.relu(dot(x_ref[...], w1_ref[...]) + b1_ref[...])   # (rows, 2H)
        gi_scr[...] = dot(x12, wih_ref[...]) + bgi_ref[...]             # (rows, 6H)

        whh = whh_ref[...]          # (2H, 6H) resident
        b_hn = bhn_ref[...]         # (B, 2H)  pre-broadcast bhh_n

        # ---------- tiny serial recurrence: gh matmul + GRU elementwise -------
        def step(s, h12):
            r0 = pl.multiple_of(s * B, B)
            gi = gi_scr[pl.ds(r0, B), :]                                # (B, 6H)
            gh = dot(h12, whh)                                          # (B, 6H)
            r = jax.nn.sigmoid(gi[:, 0:H2] + gh[:, 0:H2])
            z = jax.nn.sigmoid(gi[:, H2:2 * H2] + gh[:, H2:2 * H2])
            n = jnp.tanh(gi[:, 2 * H2:3 * H2] + r * (gh[:, 2 * H2:3 * H2] + b_hn))
            h_new = (1.0 - z) * n + z * h12                             # (B, 2H)
            h_scr[pl.ds(r0, B), :] = h_new
            return h_new

        h_last = jax.lax.fori_loop(0, tb, step, h_carry[...], unroll=True)
        h_carry[...] = h_last       # carry hidden state to the next grid block

        # ---------- batched epilogue: fc2, logit, softmax, q-mix -------------
        h_all = h_scr[...]                                              # (rows, 2H)
        out2 = dot(h_all, w2_ref[...]) + b2_ref[...]                    # (rows, E+SA)
        agent_embed = out2[:, 0:E]
        q_flat = out2[:, E:E + SA]

        logit = dot(agent_embed, wsubt_ref[...])                        # (rows, S)
        m = jnp.max(logit, axis=-1, keepdims=True)
        e = jnp.exp(logit - m)
        prob = e * pl.reciprocal(jnp.sum(e, axis=-1, keepdims=True), approx=False)

        # q = bmm(prob[.,1,S], q[.,S,A]) — static unroll (S=4, tiny)
        q_out = prob[:, 0:1] * q_flat[:, 0:A]
        for s in range(1, S):
            q_out = q_out + prob[:, s:s + 1] * q_flat[:, s * A:(s + 1) * A]

        # single lane-dense (rows, 128) store: [h | q | logit | pad]
        pad = jnp.zeros((rows, OUT_LANES - H2 - A - S), jnp.float32)
        out_ref[...] = jnp.concatenate([h_all, q_out, logit, pad], axis=-1)

    return kernel


# ----------------------- pallas_call wrapper (rollout) -----------------------
def _rollout_pallas(inputs_T, h0, packed, tb):
    """inputs_T: (T, B, F); h0: (B, 2H) = [h_agent | h_policy]."""
    T = inputs_T.shape[0]
    nblk = -(-T // tb)
    T_pad = nblk * tb
    if T_pad != T:
        inputs_T = jnp.pad(inputs_T, ((0, T_pad - T), (0, 0), (0, 0)))
    x_flat = inputs_T.reshape(T_pad * B, INPUT_SHAPE)
    rows = tb * B
    c2 = lambda i: (0, 0)   # resident params / h0: DMA'd once

    grid_spec = pltpu.PrefetchScalarGridSpec(
        num_scalar_prefetch=0,
        grid=(nblk,),
        in_specs=[
            pl.BlockSpec((B, H2), c2),                              # h0
            pl.BlockSpec((rows, INPUT_SHAPE), lambda i: (i, 0)),    # inputs (T*B rows)
            pl.BlockSpec((INPUT_SHAPE, H2), c2),                    # w1 (fused fc1)
            pl.BlockSpec((1, H2), c2),                              # b1
            pl.BlockSpec((H2, G), c2),                              # Wih (block-diag)
            pl.BlockSpec((1, G), c2),                               # bih (+bhh for r,z)
            pl.BlockSpec((H2, G), c2),                              # Whh (block-diag)
            pl.BlockSpec((B, H2), c2),                              # bhh_n, pre-broadcast
            pl.BlockSpec((H2, W2C), c2),                            # w2 (block-diag)
            pl.BlockSpec((1, W2C), c2),                             # b2
            pl.BlockSpec((EMBED, N_SUBTASKS), c2),                  # tanh(Wsub)^T
        ],
        out_specs=pl.BlockSpec((rows, OUT_LANES), lambda i: (i, 0)),
        scratch_shapes=[
            pltpu.VMEM((B, H2), jnp.float32),      # hidden carry across blocks
            pltpu.VMEM((rows, G), jnp.float32),    # gi stash (prologue -> loop)
            pltpu.VMEM((rows, H2), jnp.float32),   # h stash (loop -> epilogue)
        ],
    )
    out = pl.pallas_call(
        _make_kernel(tb),
        out_shape=jax.ShapeDtypeStruct((T_pad * B, OUT_LANES), jnp.float32),
        grid_spec=grid_spec,
        compiler_params=pltpu.CompilerParams(
            dimension_semantics=("arbitrary",)),   # sequential: hidden carried in scratch
    )(h0, x_flat, packed["w1"], packed["b1"], packed["wih"], packed["b_gi"],
      packed["whh"], packed["b_hn"], packed["w2"], packed["b2"],
      packed["wsubt"])
    return out.reshape(T_pad, B, OUT_LANES)[:T]


@jax.jit
def ldsa_rollout(inputs_T, h_subtask_policy0, h_agent_embed0, packed):
    """T forward steps with the timestep loop inside the kernel."""
    T = inputs_T.shape[0]
    tb = min(ROLLOUT_BLOCK_T, T)
    h0 = jnp.concatenate([h_agent_embed0, h_subtask_policy0], axis=1)
    out = _rollout_pallas(inputs_T, h0, packed, tb)
    h_a = out[:, :, 0:HIDDEN]
    h_p = out[:, :, HIDDEN:H2]
    q = out[:, :, H2:H2 + N_ACTIONS]
    logit = out[:, :, H2 + N_ACTIONS:H2 + N_ACTIONS + N_SUBTASKS]
    return q, h_p, h_a, logit


@jax.jit
def ldsa_forward(inputs, h_subtask_policy, h_agent_embed, packed):
    """Single forward step matching LDSAAgent.forward() return signature."""
    h0 = jnp.concatenate([h_agent_embed, h_subtask_policy], axis=1)
    out = _rollout_pallas(inputs[None], h0, packed, tb=1)[0]    # (B, 128)
    h_a = out[:, 0:HIDDEN]
    h_p = out[:, HIDDEN:H2]
    q = out[:, H2:H2 + N_ACTIONS]
    logit = out[:, H2 + N_ACTIONS:H2 + N_ACTIONS + N_SUBTASKS]
    subtask_prob_logit = logit.reshape(BS, N_AGENTS, N_SUBTASKS)
    subtask_embed = jnp.broadcast_to(
        packed["sub_embed"][None], (BS, N_SUBTASKS, EMBED))
    return q, h_p, h_a, subtask_prob_logit, subtask_embed


# ------------------------- parameter packing (wrapper) ------------------------
def pack_params(p):
    """Build resident fused parameter tensors from per-layer params."""
    f32 = jnp.float32
    H, E = HIDDEN, EMBED
    zHH = jnp.zeros((H, H), f32)

    def interleave_gates(wa, wp):
        # wa, wp: (H, 3H) transposed GRU weights, column layout [r | z | n].
        # Output (2H, 6H): rows [branch_a ; branch_p], cols [r_a|r_p|z_a|z_p|n_a|n_p].
        ra, za, na = wa[:, 0:H], wa[:, H:2 * H], wa[:, 2 * H:3 * H]
        rp, zp, np_ = wp[:, 0:H], wp[:, H:2 * H], wp[:, 2 * H:3 * H]
        top = jnp.concatenate([ra, zHH, za, zHH, na, zHH], axis=1)
        bot = jnp.concatenate([zHH, rp, zHH, zp, zHH, np_], axis=1)
        return jnp.concatenate([top, bot], axis=0)

    def gate(b, g):
        return b[:, g * H:(g + 1) * H]

    b_gi = jnp.concatenate([                                  # bih (+bhh for r,z)
        gate(p["bih_a"], 0) + gate(p["bhh_a"], 0),
        gate(p["bih_p"], 0) + gate(p["bhh_p"], 0),
        gate(p["bih_a"], 1) + gate(p["bhh_a"], 1),
        gate(p["bih_p"], 1) + gate(p["bhh_p"], 1),
        gate(p["bih_a"], 2),
        gate(p["bih_p"], 2),
    ], axis=1)                                                # (1, 6H)
    b_hn_row = jnp.concatenate([gate(p["bhh_a"], 2),
                                gate(p["bhh_p"], 2)], axis=1)  # (1, 2H)

    w2 = jnp.concatenate([
        jnp.concatenate([p["w2a"], jnp.zeros((H, SA), f32)], axis=1),
        jnp.concatenate([jnp.zeros((H, E), f32), p["w2p"]], axis=1),
    ], axis=0)                                                # (2H, E+SA)
    b2 = jnp.concatenate([p["b2a"], p["b2p"]], axis=1)        # (1, E+SA)

    sub_embed = jnp.tanh(p["wsub"])                           # (S, E), use_tanh

    return {
        "w1": jnp.concatenate([p["w1a"], p["w1p"]], axis=1),          # (F, 2H)
        "b1": jnp.concatenate([p["b1a"], p["b1p"]], axis=1),          # (1, 2H)
        "wih": interleave_gates(p["wih_a"], p["wih_p"]),              # (2H, 6H)
        "b_gi": b_gi,                                                 # (1, 6H)
        "whh": interleave_gates(p["whh_a"], p["whh_p"]),              # (2H, 6H)
        "b_hn": jnp.broadcast_to(b_hn_row, (B, H2)),                  # (B, 2H)
        "w2": w2,                                                     # (2H, 48)
        "b2": b2,                                                     # (1, 48)
        "wsubt": jnp.transpose(sub_embed),                            # (E, S)
        "sub_embed": sub_embed,                                       # (S, E)
    }


# ------------------------- deterministic param init --------------------------
def init_params(key):
    def uniform(key, shape, fan_in):
        bound = 1.0 / np.sqrt(fan_in)
        return jax.random.uniform(key, shape, jnp.float32, -bound, bound)

    keys = jax.random.split(key, 20)
    H, F, E, S, A = HIDDEN, INPUT_SHAPE, EMBED, N_SUBTASKS, N_ACTIONS
    return {
        "w1a": uniform(keys[0], (F, H), F),
        "b1a": uniform(keys[1], (1, H), F),
        "wih_a": uniform(keys[2], (H, 3 * H), H),
        "whh_a": uniform(keys[3], (H, 3 * H), H),
        "bih_a": uniform(keys[4], (1, 3 * H), H),
        "bhh_a": uniform(keys[5], (1, 3 * H), H),
        "w2a": uniform(keys[6], (H, E), H),
        "b2a": uniform(keys[7], (1, E), H),
        "wsub": uniform(keys[8], (S, E), S),
        "w1p": uniform(keys[9], (F, H), F),
        "b1p": uniform(keys[10], (1, H), F),
        "wih_p": uniform(keys[11], (H, 3 * H), H),
        "whh_p": uniform(keys[12], (H, 3 * H), H),
        "bih_p": uniform(keys[13], (1, 3 * H), H),
        "bhh_p": uniform(keys[14], (1, 3 * H), H),
        "w2p": uniform(keys[15], (H, S * A), H),
        "b2p": uniform(keys[16], (1, S * A), H),
    }


# ---------------------------- pure-JAX reference ------------------------------
def reference_forward(inputs, h_p_in, h_a_in, p):
    H, S, A = HIDDEN, N_SUBTASKS, N_ACTIONS

    def gru(x, h, wih, whh, bih, bhh):
        gi = x @ wih + bih
        gh = h @ whh + bhh
        r = jax.nn.sigmoid(gi[:, :H] + gh[:, :H])
        z = jax.nn.sigmoid(gi[:, H:2 * H] + gh[:, H:2 * H])
        n = jnp.tanh(gi[:, 2 * H:] + r * gh[:, 2 * H:])
        return (1.0 - z) * n + z * h

    x1 = jax.nn.relu(inputs @ p["w1a"] + p["b1a"])
    h_a = gru(x1, h_a_in, p["wih_a"], p["whh_a"], p["bih_a"], p["bhh_a"])
    agent_embed = (h_a @ p["w2a"] + p["b2a"]).reshape(BS, N_AGENTS, EMBED)
    sub_embed = jnp.tanh(p["wsub"])
    sub_embed_b = jnp.broadcast_to(sub_embed[None], (BS, S, EMBED))

    x2 = jax.nn.relu(inputs @ p["w1p"] + p["b1p"])
    h_p = gru(x2, h_p_in, p["wih_p"], p["whh_p"], p["bih_p"], p["bhh_p"])
    q = (h_p @ p["w2p"] + p["b2p"]).reshape(B, S, A)

    logit = jnp.einsum("bne,bse->bns", agent_embed, sub_embed_b)
    prob = jax.nn.softmax(logit, axis=-1).reshape(B, 1, S)
    q_out = jnp.einsum("bis,bsa->bia", prob, q).squeeze(1)
    return q_out, h_p, h_a, logit, sub_embed_b


def reference_rollout(inputs_T, h_p0, h_a0, p):
    qs, hps, has, logits = [], [], [], []
    h_p, h_a = h_p0, h_a0
    for t in range(inputs_T.shape[0]):
        q, h_p, h_a, logit, _ = reference_forward(inputs_T[t], h_p, h_a, p)
        qs.append(q)
        hps.append(h_p)
        has.append(h_a)
        logits.append(logit.reshape(B, N_SUBTASKS))
    return jnp.stack(qs), jnp.stack(hps), jnp.stack(has), jnp.stack(logits)


# --------------------------------- main ---------------------------------------
if __name__ == "__main__":
    key = jax.random.PRNGKey(0)
    k_inp, k_hp, k_ha, k_par, k_seq = jax.random.split(key, 5)

    params = init_params(k_par)
    packed = pack_params(params)

    inputs = jax.random.normal(k_inp, (B, INPUT_SHAPE), jnp.float32)
    h_p0 = jax.random.normal(k_hp, (B, HIDDEN), jnp.float32)
    h_a0 = jax.random.normal(k_ha, (B, HIDDEN), jnp.float32)

    # --- single forward step (module semantics) ---
    outs = jax.block_until_ready(ldsa_forward(inputs, h_p0, h_a0, packed))
    refs = reference_forward(inputs, h_p0, h_a0, params)
    for o, r in zip(outs, refs):
        np.testing.assert_allclose(np.asarray(o), np.asarray(r),
                                   rtol=1e-5, atol=1e-5)

    # --- T-step rollout: multi-block grid (Tb=8) + time padding exercised ---
    inputs_T = jax.random.normal(k_seq, (T_DEMO, B, INPUT_SHAPE), jnp.float32)
    q_T, hp_T, ha_T, logit_T = jax.block_until_ready(
        ldsa_rollout(inputs_T, h_p0, h_a0, packed))
    q_r, hp_r, ha_r, logit_r = reference_rollout(inputs_T, h_p0, h_a0, params)
    np.testing.assert_allclose(np.asarray(q_T), np.asarray(q_r),
                               rtol=2e-5, atol=2e-5)
    np.testing.assert_allclose(np.asarray(hp_T), np.asarray(hp_r),
                               rtol=2e-5, atol=2e-5)
    np.testing.assert_allclose(np.asarray(ha_T), np.asarray(ha_r),
                               rtol=2e-5, atol=2e-5)
    np.testing.assert_allclose(np.asarray(logit_T), np.asarray(logit_r),
                               rtol=2e-5, atol=2e-5)

    print("KERNEL_OK")
</pallas_src>

<mosaic_0001>
module attributes {stable_mosaic.version = 11 : i64} {
  func.func @kernel(%arg0: i32, %arg1: memref<8x64xf32, #tpu.memory_space<vmem>>, %arg2: memref<8x32xf32, #tpu.memory_space<vmem>>, %arg3: memref<32x64xf32, #tpu.memory_space<vmem>>, %arg4: memref<1x64xf32, #tpu.memory_space<vmem>>, %arg5: memref<64x192xf32, #tpu.memory_space<vmem>>, %arg6: memref<1x192xf32, #tpu.memory_space<vmem>>, %arg7: memref<64x192xf32, #tpu.memory_space<vmem>>, %arg8: memref<8x64xf32, #tpu.memory_space<vmem>>, %arg9: memref<64x48xf32, #tpu.memory_space<vmem>>, %arg10: memref<1x48xf32, #tpu.memory_space<vmem>>, %arg11: memref<16x4xf32, #tpu.memory_space<vmem>>, %arg12: memref<8x128xf32, #tpu.memory_space<vmem>>, %arg13: memref<8x64xf32, #tpu.memory_space<vmem>>, %arg14: memref<8x192xf32, #tpu.memory_space<vmem>>, %arg15: memref<8x64xf32, #tpu.memory_space<vmem>>) attributes {dimension_semantics = [#tpu.dimension_semantics<arbitrary>], iteration_bounds = array<i64: 1>, scalar_prefetch = 0 : i64, scratch_operands = 3 : i64, tpu.core_type = #tpu.core_type<tc>, window_params = [{pipeline_mode = #tpu.pipeline_mode<synchronous>, transform_indices = @transform_0, window_bounds = array<i64: 8, 64>}, {transform_indices = @transform_1, window_bounds = array<i64: 8, 32>}, {pipeline_mode = #tpu.pipeline_mode<synchronous>, transform_indices = @transform_2, window_bounds = array<i64: 32, 64>}, {pipeline_mode = #tpu.pipeline_mode<synchronous>, transform_indices = @transform_3, window_bounds = array<i64: 1, 64>}, {pipeline_mode = #tpu.pipeline_mode<synchronous>, transform_indices = @transform_4, window_bounds = array<i64: 64, 192>}, {pipeline_mode = #tpu.pipeline_mode<synchronous>, transform_indices = @transform_5, window_bounds = array<i64: 1, 192>}, {pipeline_mode = #tpu.pipeline_mode<synchronous>, transform_indices = @transform_6, window_bounds = array<i64: 64, 192>}, {pipeline_mode = #tpu.pipeline_mode<synchronous>, transform_indices = @transform_7, window_bounds = array<i64: 8, 64>}, {pipeline_mode = #tpu.pipeline_mode<synchronous>, transform_indices = @transform_8, window_bounds = array<i64: 64, 48>}, {pipeline_mode = #tpu.pipeline_mode<synchronous>, transform_indices = @transform_9, window_bounds = array<i64: 1, 48>}, {pipeline_mode = #tpu.pipeline_mode<synchronous>, transform_indices = @transform_10, window_bounds = array<i64: 16, 4>}, {transform_indices = @transform_11, window_bounds = array<i64: 8, 128>}]} {
    %c0_i32 = arith.constant 0 : i32
    %0 = arith.cmpi eq, %arg0, %c0_i32 : i32
    %1 = arith.extui %0 : i1 to i32
    %c0_i32_0 = arith.constant 0 : i32
    %2 = arith.cmpi ne, %1, %c0_i32_0 : i32
    scf.if %2 {
      %c0_44 = arith.constant 0 : index
      %c0_45 = arith.constant 0 : index
      %97 = vector.load %arg1[%c0_44, %c0_45] : memref<8x64xf32, #tpu.memory_space<vmem>>, vector<8x64xf32>
      %c0_46 = arith.constant 0 : index
      %c0_47 = arith.constant 0 : index
      %98 = vector.load %arg13[%c0_46, %c0_47] : memref<8x64xf32, #tpu.memory_space<vmem>>, vector<8x64xf32>
      tpu.vector_store %arg13[%c0_46, %c0_47], %97 {strides = array<i32>} : memref<8x64xf32, #tpu.memory_space<vmem>>, vector<8x64xf32>,
    } else {
    }
    %c0 = arith.constant 0 : index
    %c0_1 = arith.constant 0 : index
    %3 = vector.load %arg2[%c0, %c0_1] : memref<8x32xf32, #tpu.memory_space<vmem>>, vector<8x32xf32>
    %c0_2 = arith.constant 0 : index
    %c0_3 = arith.constant 0 : index
    %4 = vector.load %arg3[%c0_2, %c0_3] : memref<32x64xf32, #tpu.memory_space<vmem>>, vector<32x64xf32>
    %cst = arith.constant dense<0.000000e+00> : vector<8x64xf32>
    %5 = tpu.matmul %3, %4, %cst {dimension_numbers = #tpu.dot_dimension_numbers<[1], [0], [0], [1], [0, 0, 1, 1], [], []>} : vector<8x32xf32>, vector<32x64xf32>, vector<8x64xf32> -> vector<8x64xf32>
    %c0_4 = arith.constant 0 : index
    %c0_5 = arith.constant 0 : index
    %6 = vector.load %arg4[%c0_4, %c0_5] : memref<1x64xf32, #tpu.memory_space<vmem>>, vector<1x64xf32>
    %7 = vector.broadcast %6 : vector<1x64xf32> to vector<8x64xf32>
    %8 = arith.addf %5, %7 : vector<8x64xf32>
    %cst_6 = arith.constant 0.000000e+00 : f32
    %9 = vector.broadcast %cst_6 : f32 to vector<8x64xf32>
    %10 = arith.maximumf %8, %9 : vector<8x64xf32>
    %c0_7 = arith.constant 0 : index
    %c0_8 = arith.constant 0 : index
    %11 = vector.load %arg5[%c0_7, %c0_8] : memref<64x192xf32, #tpu.memory_space<vmem>>, vector<64x192xf32>
    %cst_9 = arith.constant dense<0.000000e+00> : vector<8x192xf32>
    %12 = tpu.matmul %10, %11, %cst_9 {dimension_numbers = #tpu.dot_dimension_numbers<[1], [0], [0], [1], [0, 0, 1, 1], [], []>} : vector<8x64xf32>, vector<64x192xf32>, vector<8x192xf32> -> vector<8x192xf32>
    %c0_10 = arith.constant 0 : index
    %c0_11 = arith.constant 0 : index
    %13 = vector.load %arg6[%c0_10, %c0_11] : memref<1x192xf32, #tpu.memory_space<vmem>>, vector<1x192xf32>
    %14 = vector.broadcast %13 : vector<1x192xf32> to vector<8x192xf32>
    %15 = arith.addf %12, %14 : vector<8x192xf32>
    %c0_12 = arith.constant 0 : index
    %c0_13 = arith.constant 0 : index
    %16 = vector.load %arg14[%c0_12, %c0_13] : memref<8x192xf32, #tpu.memory_space<vmem>>, vector<8x192xf32>
    tpu.vector_store %arg14[%c0_12, %c0_13], %15 {strides = array<i32>} : memref<8x192xf32, #tpu.memory_space<vmem>>, vector<8x192xf32>,
    %c0_14 = arith.constant 0 : index
    %c0_15 = arith.constant 0 : index
    %17 = vector.load %arg7[%c0_14, %c0_15] : memref<64x192xf32, #tpu.memory_space<vmem>>, vector<64x192xf32>
    %c0_16 = arith.constant 0 : index
    %c0_17 = arith.constant 0 : index
    %18 = vector.load %arg8[%c0_16, %c0_17] : memref<8x64xf32, #tpu.memory_space<vmem>>, vector<8x64xf32>
    %c0_18 = arith.constant 0 : index
    %c0_19 = arith.constant 0 : index
    %19 = vector.load %arg13[%c0_18, %c0_19] : memref<8x64xf32, #tpu.memory_space<vmem>>, vector<8x64xf32>
    %c0_i32_20 = arith.constant 0 : i32
    %c8_i32 = arith.constant 8 : i32
    %20 = arith.muli %c0_i32_20, %c8_i32 : i32
    %21 = tpu.assume_multiple %20, 8 : i32
    %22 = arith.index_cast %21 : i32 to index
    %c0_21 = arith.constant 0 : index
    %23 = vector.load %arg14[%22, %c0_21] : memref<8x192xf32, #tpu.memory_space<vmem>>, vector<8x192xf32>
    %cst_22 = arith.constant dense<0.000000e+00> : vector<8x192xf32>
    %24 = tpu.matmul %19, %17, %cst_22 {dimension_numbers = #tpu.dot_dimension_numbers<[1], [0], [0], [1], [0, 0, 1, 1], [], []>} : vector<8x64xf32>, vector<64x192xf32>, vector<8x192xf32> -> vector<8x192xf32>
    %25 = vector.extract_strided_slice %23 {offsets = [0, 0], sizes = [8, 64], strides = [1, 1]} : vector<8x192xf32> to vector<8x64xf32>
    %26 = vector.extract_strided_slice %24 {offsets = [0, 0], sizes = [8, 64], strides = [1, 1]} : vector<8x192xf32> to vector<8x64xf32>
    %27 = arith.addf %25, %26 : vector<8x64xf32>
    %28 = arith.negf %27 : vector<8x64xf32>
    %29 = math.exp %28 : vector<8x64xf32>
    %cst_23 = arith.constant 1.000000e+00 : f32
    %30 = vector.broadcast %cst_23 : f32 to vector<8x64xf32>
    %31 = arith.addf %30, %29 : vector<8x64xf32>
    %32 = arith.divf %30, %31 : vector<8x64xf32>
    %33 = vector.extract_strided_slice %23 {offsets = [0, 64], sizes = [8, 64], strides = [1, 1]} : vector<8x192xf32> to vector<8x64xf32>
    %34 = vector.extract_strided_slice %24 {offsets = [0, 64], sizes = [8, 64], strides = [1, 1]} : vector<8x192xf32> to vector<8x64xf32>
    %35 = arith.addf %33, %34 : vector<8x64xf32>
    %36 = arith.negf %35 : vector<8x64xf32>
    %37 = math.exp %36 : vector<8x64xf32>
    %cst_24 = arith.constant 1.000000e+00 : f32
    %38 = vector.broadcast %cst_24 : f32 to vector<8x64xf32>
    %39 = arith.addf %38, %37 : vector<8x64xf32>
    %40 = arith.divf %38, %39 : vector<8x64xf32>
    %41 = vector.extract_strided_slice %23 {offsets = [0, 128], sizes = [8, 64], strides = [1, 1]} : vector<8x192xf32> to vector<8x64xf32>
    %42 = vector.extract_strided_slice %24 {offsets = [0, 128], sizes = [8, 64], strides = [1, 1]} : vector<8x192xf32> to vector<8x64xf32>
    %43 = arith.addf %42, %18 : vector<8x64xf32>
    %44 = arith.mulf %32, %43 : vector<8x64xf32>
    %45 = arith.addf %41, %44 : vector<8x64xf32>
    %46 = math.tanh %45 : vector<8x64xf32>
    %cst_25 = arith.constant 1.000000e+00 : f32
    %47 = vector.broadcast %cst_25 : f32 to vector<8x64xf32>
    %48 = arith.subf %47, %40 : vector<8x64xf32>
    %49 = arith.mulf %48, %46 : vector<8x64xf32>
    %50 = arith.mulf %40, %19 : vector<8x64xf32>
    %51 = arith.addf %49, %50 : vector<8x64xf32>
    %52 = arith.index_cast %21 : i32 to index
    %c0_26 = arith.constant 0 : index
    %53 = vector.load %arg15[%52, %c0_26] : memref<8x64xf32, #tpu.memory_space<vmem>>, vector<8x64xf32>
    tpu.vector_store %arg15[%52, %c0_26], %51 {strides = array<i32>} : memref<8x64xf32, #tpu.memory_space<vmem>>, vector<8x64xf32>,
    %c1_i32 = arith.constant 1 : i32
    %c0_27 = arith.constant 0 : index
    %c0_28 = arith.constant 0 : index
    %54 = vector.load %arg13[%c0_27, %c0_28] : memref<8x64xf32, #tpu.memory_space<vmem>>, vector<8x64xf32>
    tpu.vector_store %arg13[%c0_27, %c0_28], %51 {strides = array<i32>} : memref<8x64xf32, #tpu.memory_space<vmem>>, vector<8x64xf32>,
    %c0_29 = arith.constant 0 : index
    %c0_30 = arith.constant 0 : index
    %55 = vector.load %arg15[%c0_29, %c0_30] : memref<8x64xf32, #tpu.memory_space<vmem>>, vector<8x64xf32>
    %c0_31 = arith.constant 0 : index
    %c0_32 = arith.constant 0 : index
    %56 = vector.load %arg9[%c0_31, %c0_32] : memref<64x48xf32, #tpu.memory_space<vmem>>, vector<64x48xf32>
    %cst_33 = arith.constant dense<0.000000e+00> : vector<8x48xf32>
    %57 = tpu.matmul %55, %56, %cst_33 {dimension_numbers = #tpu.dot_dimension_numbers<[1], [0], [0], [1], [0, 0, 1, 1], [], []>} : vector<8x64xf32>, vector<64x48xf32>, vector<8x48xf32> -> vector<8x48xf32>
    %c0_34 = arith.constant 0 : index
    %c0_35 = arith.constant 0 : index
    %58 = vector.load %arg10[%c0_34, %c0_35] : memref<1x48xf32, #tpu.memory_space<vmem>>, vector<1x48xf32>
    %59 = vector.broadcast %58 : vector<1x48xf32> to vector<8x48xf32>
    %60 = arith.addf %57, %59 : vector<8x48xf32>
    %61 = vector.extract_strided_slice %60 {offsets = [0, 0], sizes = [8, 16], strides = [1, 1]} : vector<8x48xf32> to vector<8x16xf32>
    %62 = vector.extract_strided_slice %60 {offsets = [0, 16], sizes = [8, 32], strides = [1, 1]} : vector<8x48xf32> to vector<8x32xf32>
    %c0_36 = arith.constant 0 : index
    %c0_37 = arith.constant 0 : index
    %63 = vector.load %arg11[%c0_36, %c0_37] : memref<16x4xf32, #tpu.memory_space<vmem>>, vector<16x4xf32>
    %cst_38 = arith.constant dense<0.000000e+00> : vector<8x4xf32>
    %64 = tpu.matmul %61, %63, %cst_38 {dimension_numbers = #tpu.dot_dimension_numbers<[1], [0], [0], [1], [0, 0, 1, 1], [], []>} : vector<8x16xf32>, vector<16x4xf32>, vector<8x4xf32> -> vector<8x4xf32>
    %cst_39 = arith.constant dense<0xFF800000> : vector<8xf32>
    %65 = vector.multi_reduction <maximumf>, %64, %cst_39 [1] : vector<8x4xf32> to vector<8xf32>
    %66 = vector.shape_cast %65 : vector<8xf32> to vector<8x1xf32>
    %67 = vector.broadcast %66 : vector<8x1xf32> to vector<8x4xf32>
    %68 = arith.subf %64, %67 : vector<8x4xf32>
    %69 = math.exp %68 : vector<8x4xf32>
    %cst_40 = arith.constant dense<0.000000e+00> : vector<8xf32>
    %70 = vector.multi_reduction <add>, %69, %cst_40 [1] : vector<8x4xf32> to vector<8xf32>
    %71 = vector.shape_cast %70 : vector<8xf32> to vector<8x1xf32>
    %72 = tpu.reciprocal %71 : vector<8x1xf32> -> vector<8x1xf32>
    %73 = vector.broadcast %72 : vector<8x1xf32> to vector<8x4xf32>
    %74 = arith.mulf %69, %73 : vector<8x4xf32>
    %75 = vector.extract_strided_slice %74 {offsets = [0, 0], sizes = [8, 1], strides = [1, 1]} : vector<8x4xf32> to vector<8x1xf32>
    %76 = vector.extract_strided_slice %62 {offsets = [0, 0], sizes = [8, 8], strides = [1, 1]} : vector<8x32xf32> to vector<8x8xf32>
    %77 = vector.broadcast %75 : vector<8x1xf32> to vector<8x8xf32>
    %78 = arith.mulf %77, %76 : vector<8x8xf32>
    %79 = vector.extract_strided_slice %74 {offsets = [0, 1], sizes = [8, 1], strides = [1, 1]} : vector<8x4xf32> to vector<8x1xf32>
    %80 = vector.extract_strided_slice %62 {offsets = [0, 8], sizes = [8, 8], strides = [1, 1]} : vector<8x32xf32> to vector<8x8xf32>
    %81 = vector.broadcast %79 : vector<8x1xf32> to vector<8x8xf32>
    %82 = arith.mulf %81, %80 : vector<8x8xf32>
    %83 = arith.addf %78, %82 : vector<8x8xf32>
    %84 = vector.extract_strided_slice %74 {offsets = [0, 2], sizes = [8, 1], strides = [1, 1]} : vector<8x4xf32> to vector<8x1xf32>
    %85 = vector.extract_strided_slice %62 {offsets = [0, 16], sizes = [8, 8], strides = [1, 1]} : vector<8x32xf32> to vector<8x8xf32>
    %86 = vector.broadcast %84 : vector<8x1xf32> to vector<8x8xf32>
    %87 = arith.mulf %86, %85 : vector<8x8xf32>
    %88 = arith.addf %83, %87 : vector<8x8xf32>
    %89 = vector.extract_strided_slice %74 {offsets = [0, 3], sizes = [8, 1], strides = [1, 1]} : vector<8x4xf32> to vector<8x1xf32>
    %90 = vector.extract_strided_slice %62 {offsets = [0, 24], sizes = [8, 8], strides = [1, 1]} : vector<8x32xf32> to vector<8x8xf32>
    %91 = vector.broadcast %89 : vector<8x1xf32> to vector<8x8xf32>
    %92 = arith.mulf %91, %90 : vector<8x8xf32>
    %93 = arith.addf %88, %92 : vector<8x8xf32>
    %cst_41 = arith.constant 0.000000e+00 : f32
    %94 = vector.broadcast %cst_41 : f32 to vector<8x52xf32>
    %95 = tpu.concatenate %55, %93, %64, %94 in 1 : vector<8x64xf32>, vector<8x8xf32>, vector<8x4xf32>, vector<8x52xf32> -> vector<8x128xf32>
    %c0_42 = arith.constant 0 : index
    %c0_43 = arith.constant 0 : index
    %96 = vector.load %arg12[%c0_42, %c0_43] : memref<8x128xf32, #tpu.memory_space<vmem>>, vector<8x128xf32>
    tpu.vector_store %arg12[%c0_42, %c0_43], %95 {strides = array<i32>} : memref<8x128xf32, #tpu.memory_space<vmem>>, vector<8x128xf32>,
    return
  }
  func.func @transform_0(%arg0: i32) -> (i32, i32) {
    %c0_i32 = arith.constant 0 : i32
    %c0_i32_0 = arith.constant 0 : i32
    %c0_i32_1 = arith.constant 0 : i32
    return %c0_i32, %c0_i32_0 : i32, i32
  }
  func.func @transform_1(%arg0: i32) -> (i32, i32) {
    %c0_i32 = arith.constant 0 : i32
    %c0_i32_0 = arith.constant 0 : i32
    return %arg0, %c0_i32 : i32, i32
  }
  func.func @transform_2(%arg0: i32) -> (i32, i32) {
    %c0_i32 = arith.constant 0 : i32
    %c0_i32_0 = arith.constant 0 : i32
    %c0_i32_1 = arith.constant 0 : i32
    return %c0_i32, %c0_i32_0 : i32, i32
  }
  func.func @transform_3(%arg0: i32) -> (i32, i32) {
    %c0_i32 = arith.constant 0 : i32
    %c0_i32_0 = arith.constant 0 : i32
    %c0_i32_1 = arith.constant 0 : i32
    return %c0_i32, %c0_i32_0 : i32, i32
  }
  func.func @transform_4(%arg0: i32) -> (i32, i32) {
    %c0_i32 = arith.constant 0 : i32
    %c0_i32_0 = arith.constant 0 : i32
    %c0_i32_1 = arith.constant 0 : i32
    return %c0_i32, %c0_i32_0 : i32, i32
  }
  func.func @transform_5(%arg0: i32) -> (i32, i32) {
    %c0_i32 = arith.constant 0 : i32
    %c0_i32_0 = arith.constant 0 : i32
    %c0_i32_1 = arith.constant 0 : i32
    return %c0_i32, %c0_i32_0 : i32, i32
  }
  func.func @transform_6(%arg0: i32) -> (i32, i32) {
    %c0_i32 = arith.constant 0 : i32
    %c0_i32_0 = arith.constant 0 : i32
    %c0_i32_1 = arith.constant 0 : i32
    return %c0_i32, %c0_i32_0 : i32, i32
  }
  func.func @transform_7(%arg0: i32) -> (i32, i32) {
    %c0_i32 = arith.constant 0 : i32
    %c0_i32_0 = arith.constant 0 : i32
    %c0_i32_1 = arith.constant 0 : i32
    return %c0_i32, %c0_i32_0 : i32, i32
  }
  func.func @transform_8(%arg0: i32) -> (i32, i32) {
    %c0_i32 = arith.constant 0 : i32
    %c0_i32_0 = arith.constant 0 : i32
    %c0_i32_1 = arith.constant 0 : i32
    return %c0_i32, %c0_i32_0 : i32, i32
  }
  func.func @transform_9(%arg0: i32) -> (i32, i32) {
    %c0_i32 = arith.constant 0 : i32
    %c0_i32_0 = arith.constant 0 : i32
    %c0_i32_1 = arith.constant 0 : i32
    return %c0_i32, %c0_i32_0 : i32, i32
  }
  func.func @transform_10(%arg0: i32) -> (i32, i32) {
    %c0_i32 = arith.constant 0 : i32
    %c0_i32_0 = arith.constant 0 : i32
    %c0_i32_1 = arith.constant 0 : i32
    return %c0_i32, %c0_i32_0 : i32, i32
  }
  func.func @transform_11(%arg0: i32) -> (i32, i32) {
    %c0_i32 = arith.constant 0 : i32
    %c0_i32_0 = arith.constant 0 : i32
    return %arg0, %c0_i32 : i32, i32
  }
}

</mosaic_0001>

<bundles_post_ra>
// kernel: ldsa_forward.1
= control target key start
LH: loop header
LB: loop body
LE: loop exit
PB: predicated region body
PF: predicated region fallthrough
CT: control target
= control target key end

     0   :  { %16 = vsyncpa [#allocation6], 0  ;;  %s1144_s0 = inlined_call_operand.vmem [shape: f32[8,64], index: 0, kind: input, shape index: {}]   ;;  %s1145_s1 = inlined_call_operand.vmem [shape: f32[8,32], index: 1, kind: input, shape index: {}]   ;;  %s1146_s2 = inlined_call_operand.vmem [shape: f32[32,64], index: 2, kind: input, shape index: {}]   ;;  %s1147_s3 = inlined_call_operand.hbm [shape: f32[1,64], index: 3, kind: input, shape index: {}]   ;;  %s1148_s4 = inlined_call_operand.vmem [shape: f32[64,192], index: 4, kind: input, shape index: {}]   ;;  %s1149_s5 = inlined_call_operand.vmem [shape: f32[1,192], index: 5, kind: input, shape index: {}]   ;;  %s1150_s6 = inlined_call_operand.hbm [shape: f32[64,192], index: 6, kind: input, shape index: {}]   ;;  %s1151_s7 = inlined_call_operand.hbm [shape: f32[8,64], index: 7, kind: input, shape index: {}]   ;;  %s1152_s8 = inlined_call_operand.vmem [shape: f32[64,48], index: 8, kind: input, shape index: {}]   ;;  %s1153_s9 = inlined_call_operand.hbm [shape: f32[1,48], index: 9, kind: input, shape index: {}]   ;;  %s1154_s10 = inlined_call_operand.vmem [shape: f32[16,4], index: 10, kind: input, shape index: {}]   ;;  %s1155_s11 = inlined_call_operand.vmem [shape: f32[8,128], index: 11, kind: output, shape index: {}]  }
   0x1   :  { %17 = vsyncpa [#allocation8], 0 }
   0x2   :  { %18 = vsyncpa [#allocation11], 0  ;;  %s888_s17 = smov [#allocation7]   ;;  %s794_s21 = scalar_lea.hbm %s1150_s6, 2048 }
   0x3   :  { %s44_s18 = sshll.u32 %s888_s17, 4  ;;  %p795_p0 = scmp.ne.s32.totalorder %s1150_s6, %s794_s21  ;;  %s45_s18 = int_to_ptr.vmem [resolvable:$true] %s44_s18 }
   0x4   :  { %p798_p1 = scmp.lt.u32.totalorder %s794_s21, %s1150_s6 }
   0x6   :  { %p800_p2 = pnand %p798_p1, %p795_p0 }
   0x8   :  { %803 = shalt.err (!%p800_p2)
}
   0x9   :  { %s804_s26 = scalar_lea.vmem %s45_s18, 2048  ;;  %p809_p4 = scmp.lt.s32.totalorder %s45_s18, %s45_s18 }
   0xa   :  { %p805_p3 = scmp.ne.s32.totalorder %s45_s18, %s804_s26  ;;  %p810_p5 = scmp.lt.s32.totalorder %s804_s26, %s804_s26 }
   0xc   :  { %p811_p6 = por %p810_p5, %p809_p4 }
   0xe   :  { %p812_p7 = pnand %p811_p6, %p805_p3 }
  0x10   :  { %815 = shalt.err (!%p812_p7)
}
  0x11   :  { %s889_s27 = smov 256   ;;  %s890_s28 = smov 16  }
  0x12   :  { %50 = dma.hbm_to_vmem [thread:$0]  %s1150_s6, 2048, %s45_s18, [#allocation8], %s889_s27, %s889_s27, %s890_s28  }
  0x13   :  { %s891_s12 = smov [#allocation5]   ;;  %s892_s14 = smov [#allocation9]  }
  0x14   :  { %s31_s13 = sshll.u32 %s891_s12, 4  ;;  %s57_s15 = sshll.u32 %s892_s14, 4  ;;  %s32_s13 = int_to_ptr.vmem [resolvable:$true] %s31_s13  ;;  %s58_s15 = int_to_ptr.vmem [resolvable:$true] %s57_s15 }
  0x15   :  { %s816_s19 = scalar_lea.hbm %s1147_s3, 16 }
  0x16   :  { %p817_p8 = scmp.ne.s32.totalorder %s1147_s3, %s816_s19  ;;  %p820_p9 = scmp.lt.u32.totalorder %s816_s19, %s1147_s3 }
  0x18   :  { %p822_p10 = pnand %p820_p9, %p817_p8 }
  0x1a   :  { %825 = shalt.err (!%p822_p10)
}
  0x1b   :  { %s826_s6 = scalar_lea.vmem %s32_s13, 16  ;;  %s830_s18 = scalar_lea.vmem %s32_s13, 32 }
  0x1c   :  { %p827_p11 = scmp.ne.s32.totalorder %s32_s13, %s826_s6  ;;  %p831_p12 = scmp.lt.s32.totalorder %s32_s13, %s32_s13 }
  0x1d   :  { %p832_p13 = scmp.lt.s32.totalorder %s830_s18, %s826_s6 }
  0x1f   :  { %p833_p0 = por %p832_p13, %p831_p12 }
  0x21   :  { %p834_p1 = pnand %p833_p0, %p827_p11 }
  0x23   :  { %837 = shalt.err (!%p834_p1)
}
  0x24   :  { %34 = dma.hbm_to_vmem [thread:$0]  %s1147_s3, 16, %s32_s13, [#allocation6]  }
  0x25   :  { %s838_s28 = scalar_lea.hbm %s1151_s7, 128 }
  0x26   :  { %p839_p2 = scmp.ne.s32.totalorder %s1151_s7, %s838_s28  ;;  %p842_p3 = scmp.lt.u32.totalorder %s838_s28, %s1151_s7 }
  0x28   :  { %p844_p4 = pnand %p842_p3, %p839_p2 }
  0x2a   :  { %847 = shalt.err (!%p844_p4)
}
  0x2b   :  { %s848_s16 = scalar_lea.vmem %s58_s15, 128  ;;  %p853_p6 = scmp.lt.s32.totalorder %s58_s15, %s58_s15 }
  0x2c   :  { %p849_p5 = scmp.ne.s32.totalorder %s58_s15, %s848_s16  ;;  %p854_p7 = scmp.lt.s32.totalorder %s848_s16, %s848_s16 }
  0x2e   :  { %p855_p8 = por %p854_p7, %p853_p6 }
  0x30   :  { %p856_p9 = pnand %p855_p8, %p849_p5 }
  0x32   :  { %859 = shalt.err (!%p856_p9)
}
  0x33   :  { %60 = dma.hbm_to_vmem [thread:$0]  %s1151_s7, 128, %s58_s15, [#allocation8]  }
  0x34   :  { %s893_s17 = smov [#allocation10]   ;;  %s860_s22 = scalar_lea.hbm %s1153_s9, 16 }
  0x35   :  { %s69_s19 = sshll.u32 %s893_s17, 4  ;;  %p861_p10 = scmp.ne.s32.totalorder %s1153_s9, %s860_s22  ;;  %s70_s19 = int_to_ptr.vmem [resolvable:$true] %s69_s19 }
  0x36   :  { %p864_p11 = scmp.lt.u32.totalorder %s860_s22, %s1153_s9 }
  0x38   :  { %p866_p12 = pnand %p864_p11, %p861_p10 }
  0x3a   :  { %869 = shalt.err (!%p866_p12)
}
  0x3b   :  { %s870_s25 = scalar_lea.vmem %s70_s19, 16  ;;  %s874_s7 = scalar_lea.vmem %s70_s19, 32 }
  0x3c   :  { %p871_p13 = scmp.ne.s32.totalorder %s70_s19, %s870_s25  ;;  %p875_p0 = scmp.lt.s32.totalorder %s70_s19, %s70_s19 }
  0x3d   :  { %p876_p1 = scmp.lt.s32.totalorder %s874_s7, %s870_s25 }
  0x3f   :  { %p877_p2 = por %p876_p1, %p875_p0 }
  0x41   :  { %p878_p3 = pnand %p877_p2, %p871_p13 }
  0x43   :  { %881 = shalt.err (!%p878_p3)
}
  0x44   :  { %72 = dma.hbm_to_vmem [thread:$0]  %s1153_s9, 16, %s70_s19, [#allocation11]  }
  0x45   :  { %882 = dma.done.wait [#allocation6], 16  }
  0x46   :  { %883 = vsyncadd [#allocation6], 4294967280 }
  0x47   :  { %884 = dma.done.wait [#allocation8], 2176  }
  0x48   :  { %885 = vsyncadd [#allocation8], 4294965120 }
  0x49   :  { %886 = dma.done.wait [#allocation11], 16  }
  0x4a   :  { %887 = vsyncadd [#allocation11], 4294967280  ;;  %v894_v0 = vmov 0.0|0.0   ;;  %vm895_vm0 = vmmov 0   ;;  %v896_v1 = vmov 0.0   ;;  %v95_v2 = vld [vmem:[%s1146_s2] sm:$0xff] }
  0x4b   :  { %707 = vmatprep.subr.bf16.mxu0 %v894_v0  ;;  %678 = vmatprep.mubr.msk.f32.mxu0 %vm895_vm0, %v896_v1  ;;  %v96_v3 = vld [vmem:[%s1146_s2 + $0x8] sm:$0xff]  ;;  %v97_v4 = vld [vmem:[%s1146_s2 + $0x10] sm:$0xff]  ;;  %v98_v6 = vld [vmem:[%s1146_s2 + $0x18] sm:$0xff]  ;;  %vm106_vm1 = vcmask 261120   ;;  %vm92_vm2 = vcmask 523264   ;;  %s897_s9 = smov 64  }
  0x4c   :  { %277 = vmatprep.mubr.f32.mxu1 %v896_v1  ;;  %v708_v5 = vpack.c.bf16 %v96_v3, %v95_v2  ;;  %v182_v7 = vld [vmem:[%s1148_s4 + $0x8] sm:$0xff]  ;;  %v184_v8 = vld [vmem:[%s1148_s4 + $0x18] sm:$0xff]  ;;  %v181_v9 = vld [vmem:[%s1148_s4] sm:$0xff]  ;;  %v711_v11 = vpack.c.bf16 %v98_v6, %v97_v4  ;;  %v199_v4 = vlaneseq  ;;  %vm502_vm3 = vcmask 130048   ;;  %s904_s22 = smov 104   ;;  %s905_s23 = smov 48  }
  0x4d   :  { %v183_v10 = vld [vmem:[%s1148_s4 + $0x10] sm:$0xff]  ;;  %v713_v12 = vpack.c.bf16 %v184_v8, %v182_v7  ;;  %v186_v14 = vld [vmem:[%s1148_s4 + $0x28] sm:$0xff]  ;;  %v188_v15 = vld [vmem:[%s1148_s4 + $0x38] sm:$0xff]  ;;  %vm576_vm4 = vcmask 31744   ;;  %s906_s2 = smov 72   ;;  %vm633_vm5 = vcmask 588800  }
  0x4e   :  { %709 = vmatpush3.bf16.msra.mxu0 %v708_v5  ;;  %v715_v13 = vpack.c.bf16 %v183_v10, %v181_v9  ;;  %v185_v16 = vld [vmem:[%s1148_s4 + $0x20] sm:$0xff]  ;;  %v717_v17 = vpack.c.bf16 %v188_v15, %v186_v14  ;;  %v187_v18 = vld [vmem:[%s1148_s4 + $0x30] sm:$0xff]  ;;  %v190_v19 = vld [vmem:[%s1148_s4 + $0x48] sm:$0xff]  ;;  %v200_v5 = vshrl.u32 %v199_v4, 7  ;;  %vm635_vm6 = vcmask 621568  }
  0x4f   :  { %710 = vmatprep.subr.bf16.mxu0 %v894_v0  ;;  %v192_v20 = vld [vmem:[%s1148_s4 + $0x58] sm:$0xff]  ;;  %714 = vmatprep.subr.bf16.mxu1 %v713_v12  ;;  %v287_v21 = vld [vmem:[#allocation7 + $0x8] sm:$0xff]  ;;  %v719_v22 = vpack.c.bf16 %v187_v18, %v185_v16  ;;  %v286_v24 = vld [vmem:[#allocation7] sm:$0xff] }
  0x50   :  { %716 = vmatpush1.bf16.msra.mxu1 %v715_v13  ;;  %v289_v23 = vld [vmem:[#allocation7 + $0x18] sm:$0xff]  ;;  %v288_v25 = vld [vmem:[#allocation7 + $0x10] sm:$0xff]  ;;  %v721_v27 = vpack.c.bf16 %v192_v20, %v190_v19  ;;  %v291_v33 = vld [vmem:[#allocation7 + $0x28] sm:$0xff]  ;;  %v201_v6 = vsub.s32 0, %v200_v5  ;;  %v205_v8 = vsub.s32 1, %v200_v5 }
  0x51   :  { %v94_v26 = vld [vmem:[%s1145_s1] sm:$0xff]  ;;  %718 = vmatprep.subr.bf16.mxu1 %v717_v17  ;;  %v191_v29 = vld [vmem:[%s1148_s4 + $0x50] sm:$0xff]  ;;  %v729_v30 = vpack.c.bf16 %v289_v23, %v287_v21  ;;  %v731_v31 = vpack.c.bf16 %v288_v25, %v286_v24  ;;  %v194_v46 = vld [vmem:[%s1148_s4 + $0x68] sm:$0xff] }
  0x52   :  { %712 = vmatpush3.bf16.msra.mxu0 %v711_v11  ;;  %v189_v28 = vld [vmem:[%s1148_s4 + $0x40] sm:$0xff]  ;;  %v292_v37 = vld [vmem:[#allocation7 + $0x30] sm:$0xff]  ;;  %v295_v39 = vld [vmem:[#allocation7 + $0x48] sm:$0xff] }
  0x53   :  { %730 = vmatprep.subr.bf16.mxu0 %v729_v30  ;;  %v723_v32 = vpack.c.bf16 %v191_v29, %v189_v28  ;;  %v293_v34 = vld [vmem:[#allocation7 + $0x38] sm:$0xff]  ;;  %v290_v36 = vld [vmem:[#allocation7 + $0x20] sm:$0xff]  ;;  %v296_v43 = vld [vmem:[#allocation7 + $0x50] sm:$0xff] }
  0x54   :  { %720 = vmatpush1.bf16.msra.mxu1 %v719_v22  ;;  %v733_v35 = vpack.c.bf16 %v293_v34, %v291_v33  ;;  %v735_v38 = vpack.c.bf16 %v292_v37, %v290_v36  ;;  %v297_v40 = vld [vmem:[#allocation7 + $0x58] sm:$0xff]  ;;  %v294_v42 = vld [vmem:[#allocation7 + $0x40] sm:$0xff]  ;;  %v195_v50 = vld [vmem:[%s1148_s4 + $0x70] sm:$0xff] }
  0x55   :  { %679 = vmatmul.mubr.msk.f32.vlgmr.msra.gmra.mrb[0].mxu0 %vm106_vm1, %v94_v26  ;;  %722 = vmatprep.subr.bf16.mxu1 %v721_v27  ;;  %v737_v41 = vpack.c.bf16 %v297_v40, %v295_v39  ;;  %v91_v44 = vld [vmem:[%s1144_s0] sm:$0xff]  ;;  %v739_v45 = vpack.c.bf16 %v296_v43, %v294_v42  ;;  %v196_v47 = vld [vmem:[%s1148_s4 + $0x78] sm:$0xff]  ;;  %v299_v51 = vld [vmem:[#allocation7 + $0x68] sm:$0xff] }
  0x56   :  { %732 = vmatpush1.bf16.msra.mxu0 %v731_v31  ;;  %376 = vmatprep.mubr.f32.mxu0 %v896_v1  ;;  %93 = vst.msk [vmem:[#allocation2] sm:$0xff] %vm92_vm2, %v91_v44  ;;  %v725_v48 = vpack.c.bf16 %v196_v47, %v194_v46  ;;  %v193_v49 = vld [vmem:[%s1148_s4 + $0x60] sm:$0xff]  ;;  %v300_v55 = vld [vmem:[#allocation7 + $0x70] sm:$0xff]  ;;  %v413_v25 = vld [vmem:[%s1152_s8 + $0x8] sm:$0xff] }
  0x57   :  { %734 = vmatprep.subr.bf16.mxu0 %v733_v35  ;;  %v727_v52 = vpack.c.bf16 %v195_v50, %v193_v49  ;;  %v301_v53 = vld [vmem:[#allocation7 + $0x78] sm:$0xff]  ;;  %v298_v54 = vld [vmem:[#allocation7 + $0x60] sm:$0xff]  ;;  %v414_v26 = vld [vmem:[%s1152_s8 + $0x10] sm:$0xff] }
  0x58   :  { %724 = vmatpush1.bf16.msra.mxu1 %v723_v32  ;;  %v741_v56 = vpack.c.bf16 %v301_v53, %v299_v51  ;;  %v743_v57 = vpack.c.bf16 %v300_v55, %v298_v54  ;;  %v645_v59 = vld [vmem:[#allocation5] ss:$0 sm:$0xff]  ;;  %v302_v18 = vld [vmem:[#allocation9] sm:$0xff]  ;;  %v415_v28 = vld [vmem:[%s1152_s8 + $0x18] sm:$0xff] }
  0x59   :  { %726 = vmatprep.subr.bf16.mxu1 %v725_v48  ;;  %v197_v7 = vld [vmem:[%s1149_s5] sm:$0x3]  ;;  %v749_v29 = vpack.c.bf16 %v415_v28, %v414_v26  ;;  %v417_v32 = vld [vmem:[%s1152_s8 + $0x28] sm:$0xff]  ;;  %v418_v34 = vld [vmem:[%s1152_s8 + $0x30] sm:$0xff] }
  0x5a   :  { %736 = vmatpush1.bf16.msra.mxu0 %v735_v38  ;;  %v202_v9 = vrot.slane %v197_v7, %v201_v6  ;;  %v206_v10 = vrot.slane %v197_v7, %v205_v8  ;;  %v412_v24 = vld [vmem:[%s1152_s8] sm:$0xff]  ;;  %v419_v35 = vld [vmem:[%s1152_s8 + $0x38] sm:$0xff]  ;;  %v650_v47 = vld [vmem:[#allocation10] ss:$0 sm:$0xff] }
  0x5b   :  { %738 = vmatprep.subr.bf16.mxu0 %v737_v41  ;;  %v746_v27 = vpack.c.bf16 %v413_v25, %v412_v24  ;;  %v416_v31 = vld [vmem:[%s1152_s8 + $0x20] sm:$0xff]  ;;  %v755_v36 = vpack.c.bf16 %v419_v35, %v418_v34  ;;  %v501_v41 = vld [vmem:[%s1154_s10 + $0x8] sm:$0xff]  ;;  %s902_s8 = smov 120  }
  0x5c   :  { %728 = vmatpush1.bf16.msra.mxu1 %v727_v52  ;;  %v752_v33 = vpack.c.bf16 %v417_v32, %v416_v31  ;;  %v500_v40 = vld [vmem:[%s1154_s10] sm:$0xff]  ;;  %s903_s10 = smov 112  }
  0x5d   :  { %745 = vmatprep.subr.bf16.mxu1 %v894_v0  ;;  %v303_v58 = vld [vmem:[#allocation2] sm:$0xff]  ;;  %v758_v44 = vpack.c.bf16 %v501_v41, %v500_v40 }
  0x5e   :  { %740 = vmatpush1.bf16.msra.mxu0 %v739_v45 }
  0x5f   :  { %742 = vmatprep.subr.bf16.mxu0 %v741_v56 }
  0x62   :  { %744 = vmatpush1.bf16.msra.mxu0 %v743_v57 }
  0x63   :  { %757 = vmatprep.subr.bf16.mxu0 %v894_v0 }
  0x65   :  { %648 = vmatmul.mubr.msk.f32.vlgmr.msra.gmra.mrb[2].mxu0 %vm92_vm2, %v303_v58 }
  0x66   :  { %704 = vmatprep.mubr.msk.f32.mxu0 %vm895_vm0, %v896_v1  ;;  %759 = vmatpush3.bf16.msra.mxu0 %v758_v44 }
 0x128   :  { %v176_v60 = vpop.f32.mrb[0].mxu0 }
 0x129   :  { %v177_v61 = vadd.f32 %v645_v59, %v176_v60  ;;  %v680_v62 = vpop.f32.mrb[1].mxu0  ;;  %v898_v59 = vmov 2   ;;  %v899_v60 = vmov 1  }
 0x12a   :  { %780 = vset.pattern.permute.xlu1 %v898_v59  ;;  %779 = vset.pattern.permute.xlu0 %v899_v60 }
 0x12b   :  { %v180_v63 = vmax.f32 %v177_v61, 0.0 }
 0x12d   :  { %647 = vmatmul.mubr.msk.f32.vlgmr.msra.gmra.mrb[0].mxu1 %vm92_vm2, %v180_v63 }
 0x12e   :  { %697 = vmatprep.mubr.msk.f32.mxu1 %vm895_vm0, %v896_v1  ;;  %747 = vmatpush3.bf16.msra.mxu1 %v746_v27 }
 0x12f   :  { %748 = vmatprep.subr.bf16.mxu1 %v894_v0 }
 0x132   :  { %750 = vmatpush3.bf16.msra.mxu1 %v749_v29 }
 0x133   :  { %751 = vmatprep.subr.bf16.mxu1 %v894_v0 }
 0x136   :  { %753 = vmatpush3.bf16.msra.mxu1 %v752_v33 }
 0x137   :  { %754 = vmatprep.subr.bf16.mxu1 %v894_v0 }
 0x138   :  { %v378_v2 = vpop.f32.mrb[2].mxu0 }
 0x139   :  { %v380_v3 = vpop.f32.mrb[3].mxu0 }
 0x13a   :  { %v390_v19 = vadd.f32 %v380_v3, %v302_v18  ;;  %756 = vmatpush3.bf16.msra.mxu1 %v755_v36  ;;  %v901_v3 = vmov 0  }
 0x200   :  { %v279_v11 = vpop.f32.mrb[0].mxu1 }
 0x201   :  { %v280_v12 = vadd.f32 %v279_v11, %v202_v9  ;;  %v281_v13 = vpop.f32.mrb[1].mxu1 }
 0x202   :  { %v282_v14 = vadd.f32 %v281_v13, %v206_v10 }
 0x203   :  { %v383_v15 = vadd.f32 %v378_v2, %v280_v12  ;;  %v900_v2 = vmov 3  }
 0x204   :  { %285 = vst.msk [vmem:[#allocation3 + $0x8] sm:$0xff] %vm92_vm2, %v282_v14 }
 0x205   :  { %v649_v1 = vmul.f32 -1.442695, %v383_v15 }
 0x207   :  { %784 = vpow2.f32 %v649_v1 }
 0x20b   :  { %v308_v22 = vld [vmem:[#allocation3 + $0x8] sm:$0xff] }
 0x211   :  { %v785_v16 = vpop.eup %784 }
 0x212   :  { %v387_v17 = vadd.f32 1.0, %v785_v16 }
 0x214   :  { %786 = vrcp.f32 %v387_v17 }
 0x21e   :  { %v787_v20 = vpop.eup %786 }
 0x21f   :  { %v391_v21 = vmul.f32 %v787_v20, %v390_v19  ;;  %v394_v38 = vsub.f32 1.0, %v787_v20 }
 0x221   :  { %v392_v23 = vadd.f32 %v391_v21, %v308_v22 }
 0x223   :  { %788 = vtanh.f32 %v392_v23 }
 0x22d   :  { %v789_v30 = vpop.eup %788 }
 0x22e   :  { %396 = vrot.lane.b32.xlu0 %v789_v30, %s897_s9 }
 0x232   :  { %400 = vrot.lane.b32.xlu0 %v303_v58, %s897_s9 }
 0x2a0   :  { %v397_v37 = vpop.permute.xlu0 %396 }
 0x2a1   :  { %v399_v42 = vmul.f32 %v397_v37, %v394_v38 }
 0x2a4   :  { %v401_v39 = vpop.permute.xlu0 %400 }
 0x2a5   :  { %v403_v43 = vmul.f32 %v787_v20, %v401_v39 }
 0x2a7   :  { %v404_v45 = vadd.f32 %v403_v43, %v399_v42 }
 0x2a9   :  { %406 = vrot.lane.b32.xlu1 %v404_v45, %s897_s9 }
 0x31b   :  { %v407_v46 = vpop.permute.xlu1 %406 }
 0x31c   :  { %409 = vst.msk [vmem:[#allocation4] sm:$0xff] %vm92_vm2, %v407_v46  ;;  %410 = vst.msk [vmem:[#allocation2] sm:$0xff] %vm92_vm2, %v407_v46 }
 0x323   :  { %v1135_v0 = vld [vmem:[#allocation4] sm:$0xff] }
 0x324   :  { %698 = vmatmul.mubr.msk.f32.vlgmr.msra.gmra.mrb[2].mxu1 %vm92_vm2, %v1135_v0 }
 0x3f7   :  { %v496_v48 = vpop.f32.mrb[2].mxu1 }
 0x3f8   :  { %v497_v49 = vadd.f32 %v650_v47, %v496_v48  ;;  %v699_v50 = vpop.f32.mrb[3].mxu1 }
 0x3fa   :  { %705 = vmatmul.mubr.msk.f32.vlgmr.msra.gmra.mrb[4].mxu0 %vm502_vm3, %v497_v49 }
 0x4cd   :  { %v572_v51 = vpop.f32.mrb[4].mxu0 }
 0x4ce   :  { %v706_v52 = vpop.f32.mrb[5].mxu0  ;;  %v577_v53 = vsel %vm576_vm4, %v572_v51, -inf }
 0x4cf   :  { %578 = vmax.xlane.f32.xlu1 %v577_v53 }
 0x55c   :  { %v579_v54 = vpop.xlane.xlu1 %578 }
 0x55d   :  { %v580_v55 = vsub.f32 %v572_v51, %v579_v54 }
 0x55f   :  { %v581_v56 = vmul.f32 1.442695, %v580_v55 }
 0x561   :  { %790 = vpow2.f32 %v581_v56 }
 0x56b   :  { %v791_v57 = vpop.eup %790 }
 0x56c   :  { %v583_v58 = vsel %vm576_vm4, %v791_v57, 0.0 }
 0x56d   :  { %584 = vadd.xlane.f32.xlu0 %v583_v58 }
 0x5fa   :  { %v585_v61 = vpop.xlane.xlu0 %584 }
 0x5fb   :  { %792 = vrcp.f32 %v585_v61 }
 0x605   :  { %v793_v62 = vpop.eup %792 }
 0x606   :  { %v587_v63 = vmul.f32 %v793_v62, %v791_v57 }
 0x608   :  { %605 = vperm.xlu1 %780, %v587_v63   ;;  %595 = vperm.xlu0 %779, %v587_v63  }
 0x60c   :  { %781 = vset.pattern.permute.xlu1 %v900_v2  ;;  %783 = vset.pattern.permute.xlu0 %v900_v2 }
 0x60d   :  { %615 = vperm.xlu1 %781, %v587_v63  }
 0x611   :  { %782 = vset.pattern.permute.xlu1 %v901_v3 }
 0x612   :  { %590 = vperm.xlu1 %782, %v587_v63  }
 0x687   :  { %v606_v4 = vpop.permute.xlu1 %605  ;;  %v596_v5 = vpop.permute.xlu0 %595 }
 0x688   :  { %v598_v6 = vmul.f32 %v596_v5, %v497_v49  ;;  %v608_v7 = vmul.f32 %v606_v4, %v497_v49 }
 0x68a   :  { %600 = vrot.lane.b32.xlu1 %v598_v6, %s902_s8 }
 0x68c   :  { %v616_v8 = vpop.permute.xlu1 %615 }
 0x68d   :  { %v618_v9 = vmul.f32 %v616_v8, %v497_v49 }
 0x68e   :  { %610 = vrot.lane.b32.xlu1 %v608_v7, %s903_s10 }
 0x691   :  { %v591_v10 = vpop.permute.xlu1 %590 }
 0x692   :  { %620 = vrot.lane.b32.xlu1 %v618_v9, %s904_s22  ;;  %v593_v12 = vmul.f32 %v591_v10, %v497_v49 }
 0x6fc   :  { %v601_v11 = vpop.permute.xlu1 %600 }
 0x6fd   :  { %v603_v14 = vadd.f32 %v601_v11, %v593_v12 }
 0x700   :  { %v611_v13 = vpop.permute.xlu1 %610 }
 0x701   :  { %v613_v15 = vadd.f32 %v611_v13, %v603_v14 }
 0x704   :  { %v621_v1 = vpop.permute.xlu1 %620 }
 0x705   :  { %v623_v16 = vadd.f32 %v621_v1, %v613_v15 }
 0x707   :  { %625 = vrot.lane.b32.xlu1 %v623_v16, %s905_s23 }
 0x70b   :  { %629 = vrot.lane.b32.xlu1 %v572_v51, %s906_s2 }
 0x779   :  { %v626_v17 = vpop.permute.xlu1 %625 }
 0x77a   :  { %v632_v18 = vsel %vm92_vm2, %v1135_v0, %v626_v17 }
 0x77d   :  { %v630_v19 = vpop.permute.xlu1 %629 }
 0x77e   :  { %v634_v20 = vsel %vm633_vm5, %v632_v18, %v630_v19 }
 0x77f   :  { %v636_v21 = vsel %vm635_vm6, %v634_v20, 0.0 }
 0x780   :  { %637 = vst [vmem:[%s1155_s11] sm:$0xff] %v636_v21 }
 0x781   :  { %642 = vsyncpa [#allocation6], 1 }
 0x782   :  { %643 = vsyncpa [#allocation8], 1 }
 0x783   :  { %644 = vsyncpa [#allocation11], 1 }

</bundles_post_ra>
